<compile_context>
chip_gen: v6e
topology: v6e:2x2x1
jax: 0.10.0
libtpu: 0.0.40
codegen_flags: <defaults>
</compile_context>

<pallas_src>
import numpy as np
import jax
import jax.numpy as jnp
from jax import lax
from jax.experimental import pallas as pl
from jax.experimental.pallas import tpu as pltpu


def _round_up(x, m):
    return (x + m - 1) // m * m


def fused_embed_concat_kernel(idx_ref, tab_ref, out_ref):
    """One row-tile of the fused gather + concat.

    idx_ref: [rows, 3] int32, already offset into the combined vocab
             (word | cap + Vw | pos + Vw + Vc) - disjoint ranges.
    tab_ref: [Vtot_pad, D_pad] f32 block-diagonal table, padded to (128, 128)
             multiples (single-buffered: its block never changes).
    out_ref: [rows, D_pad] f32 -> already-concatenated (word|cap|pos) rows,
             written with one lane-dense (128-multiple) unmasked store.
    """
    idx = idx_ref[...]                                   # [rows, 3]
    rows = idx.shape[0]
    vtot = tab_ref.shape[0]

    # Multi-hot selector: exactly one 1 per disjoint vocab block.
    # Kept f32: exact 0/1 selection and v5e has no bf16 VPU path.
    iota = lax.broadcasted_iota(jnp.int32, (rows, vtot), 1)
    multihot = ((iota == idx[:, 0:1]) |
                (iota == idx[:, 1:2]) |
                (iota == idx[:, 2:3])).astype(jnp.float32)

    # Single MXU pass; padded contraction (Vtot_pad) and output (D_pad) dims
    # are multiples of 128.
    out_ref[...] = jnp.dot(multihot, tab_ref[...],
                           preferred_element_type=jnp.float32)


def build_embedding_params(word_table, cap_table, pos_table):
    """Build the padded block-diagonal table ONCE (parameter-load/init time).

    Hoisted out of the per-forward path: the assembly is a full-table HBM
    write plus three dynamic-update-slices and must not be repeated per step.
    """
    Vw, Dw = word_table.shape
    Vc, Dc = cap_table.shape
    Vp, Dpos = pos_table.shape
    Vtot = Vw + Vc + Vp
    D_out = Dw + Dc + Dpos

    Vtot_pad = _round_up(Vtot, 128)     # aligned MXU contraction dim
    D_pad = _round_up(D_out, 128)       # lane-dense output / table columns

    table = jnp.zeros((Vtot_pad, D_pad), jnp.float32)
    table = table.at[:Vw, :Dw].set(word_table.astype(jnp.float32))
    table = table.at[Vw:Vw + Vc, Dw:Dw + Dc].set(cap_table.astype(jnp.float32))
    table = table.at[Vw + Vc:Vtot, Dw + Dc:D_out].set(
        pos_table.astype(jnp.float32))

    return {
        "table": table,
        "word_table": word_table,
        "cap_table": cap_table,
        "pos_table": pos_table,
        "vocab_sizes": (Vw, Vc, Vp),
        "dims": (Dw, Dc, Dpos),
        "Vtot_pad": Vtot_pad,
        "D_pad": D_pad,
    }


def _choose_row_tile(bs_pad8):
    """Row-tile selection (multiple of 8).

    - >= 2 parallel tiles whenever possible so v7x's two TensorCores both get
      work via dimension_semantics=("parallel",);
    - up to 1024 rows/tile to amortize ~0.35us/grid-step overhead on v5e/v6e
      while staying far inside v7x's 64 MiB VMEM for this table size.
    """
    if bs_pad8 <= 8:
        return bs_pad8
    half = _round_up(pl.cdiv(bs_pad8, 2), 8)
    return min(1024, half)


def basemodel_forward(tok_inds, pos_ids, cap_inds, params, *, use_pallas=None):
    """BaseModel.forward (word_embed_type='random_init'), eval mode.

    Dropouts are identity at inference and omitted. Returns [B, S, Dw+Dc+Dp].
    """
    B, S = tok_inds.shape
    Vw, Vc, Vp = params["vocab_sizes"]
    Dw, Dc, Dpos = params["dims"]
    D_out = Dw + Dc + Dpos
    BS = B * S

    if use_pallas is None:
        # Small-input bypass: below this size the fixed pallas_call/DMA/grid
        # overhead dominates; plain XLA gather + concat wins outright.
        use_pallas = BS * D_out >= 64 * 1024

    if not use_pallas:
        return jnp.concatenate(
            [params["word_table"][tok_inds].astype(jnp.float32),
             params["cap_table"][cap_inds].astype(jnp.float32),
             params["pos_table"][pos_ids].astype(jnp.float32)],
            axis=2)

    table = params["table"]
    Vtot_pad = params["Vtot_pad"]
    D_pad = params["D_pad"]

    # Combined, offset indices: [B*S, 3]  (word | cap+Vw | pos+Vw+Vc)
    idx = jnp.stack(
        [tok_inds.reshape(-1).astype(jnp.int32),
         cap_inds.reshape(-1).astype(jnp.int32) + Vw,
         pos_ids.reshape(-1).astype(jnp.int32) + Vw + Vc],
        axis=1)

    # Rows padded to a multiple of 8 (full-width sublane stores even in the
    # single-tile path); padded rows collapse to combined row 0 and are
    # sliced off below.
    BS8 = _round_up(BS, 8)
    row_tile = _choose_row_tile(BS8)
    n_tiles = pl.cdiv(BS8, row_tile)
    BS_pad = n_tiles * row_tile
    if BS_pad != BS:
        idx = jnp.pad(idx, ((0, BS_pad - BS), (0, 0)))

    # Explicit VMEM budget: idx + out double-buffered, table single-buffered,
    # plus the [row_tile, Vtot_pad] multihot temporary, plus slack for Mosaic
    # internals.  Clamp well below v7x's 64 MiB physical VMEM.
    vmem_needed = (2 * row_tile * 128 * 4          # idx tiles (lane-padded)
                   + 2 * row_tile * D_pad * 4      # output tiles
                   + Vtot_pad * D_pad * 4          # table (single buffer)
                   + row_tile * Vtot_pad * 4)      # multihot temporary
    vmem_request = min(max(vmem_needed + (4 << 20), 16 << 20), 48 << 20)

    out2d = pl.pallas_call(
        fused_embed_concat_kernel,
        out_shape=jax.ShapeDtypeStruct((BS_pad, D_pad), jnp.float32),
        grid=(n_tiles,),
        in_specs=[
            pl.BlockSpec((row_tile, 3), lambda i: (i, 0)),
            # Grid-invariant block (index_map constant) -> single-buffered.
            pl.BlockSpec((Vtot_pad, D_pad), lambda i: (0, 0),
                         pipeline_mode=pl.Buffered(1)),
        ],
        out_specs=pl.BlockSpec((row_tile, D_pad), lambda i: (i, 0)),
        compiler_params=pltpu.CompilerParams(
            dimension_semantics=("parallel",),
            vmem_limit_bytes=vmem_request,
        ),
    )(idx, table)

    return out2d[:BS, :D_out].reshape(B, S, D_out)


def embedding_initializer_weights(key, dim, num_labels):
    """Matches nn.init.uniform_(weight, -sqrt(6/(dim+num_labels)), +sqrt(...))."""
    bound = np.sqrt(6.0 / (dim + num_labels))
    return jax.random.uniform(key, (num_labels, dim), dtype=jnp.float32,
                              minval=-bound, maxval=bound)


if __name__ == "__main__":
    # Small config consistent with the module (word_embed_type='random_init').
    B, S = 2, 8
    ner_vocab_size = 32     # len(args['ner_vocab'])
    w_dim = 32              # args['word_embed_dim']
    cap_types, cap_dim = 4, 8
    pos_vocab_size, pos_dim = 16, 8

    key = jax.random.PRNGKey(0)
    k_w, k_c, k_p, k_t, k_pi, k_ci = jax.random.split(key, 6)

    word_table = embedding_initializer_weights(k_w, w_dim, ner_vocab_size)
    cap_table = embedding_initializer_weights(k_c, cap_dim, cap_types)
    pos_table = embedding_initializer_weights(k_p, pos_dim, pos_vocab_size)

    tok_inds = jax.random.randint(k_t, (B, S), 0, ner_vocab_size, dtype=jnp.int32)
    pos_ids = jax.random.randint(k_pi, (B, S), 0, pos_vocab_size, dtype=jnp.int32)
    cap_inds = jax.random.randint(k_ci, (B, S), 0, cap_types, dtype=jnp.int32)

    # Table assembly hoisted to init (done once, not per forward call).
    params = build_embedding_params(word_table, cap_table, pos_table)

    # Force the Pallas path (the small-input bypass would otherwise take the
    # plain-XLA route at this tiny demo size).
    out = basemodel_forward(tok_inds, pos_ids, cap_inds, params,
                            use_pallas=True)
    out = jax.block_until_ready(out)

    # Reference check in plain JAX (same semantics as the torch forward).
    ref = jnp.concatenate(
        [word_table[tok_inds], cap_table[cap_inds], pos_table[pos_ids]], axis=2)
    np.testing.assert_allclose(np.asarray(out), np.asarray(ref),
                               rtol=1e-6, atol=1e-6)

    # Also exercise the small-input XLA bypass (default dispatch at this size).
    out_bypass = basemodel_forward(tok_inds, pos_ids, cap_inds, params)
    out_bypass = jax.block_until_ready(out_bypass)
    np.testing.assert_allclose(np.asarray(out_bypass), np.asarray(ref),
                               rtol=1e-6, atol=1e-6)

    assert out.shape == (B, S, w_dim + cap_dim + pos_dim)
    print("KERNEL_OK")
</pallas_src>

<mosaic_0001>
module attributes {stable_mosaic.version = 11 : i64} {
  func.func @fused_embed_concat_kernel(%arg0: i32, %arg1: memref<8x3xi32, #tpu.memory_space<vmem>>, %arg2: memref<128x128xf32, #tpu.memory_space<vmem>>, %arg3: memref<8x128xf32, #tpu.memory_space<vmem>>) attributes {dimension_semantics = [#tpu.dimension_semantics<parallel>], iteration_bounds = array<i64: 2>, scalar_prefetch = 0 : i64, scratch_operands = 0 : i64, tpu.core_type = #tpu.core_type<tc>, window_params = [{transform_indices = @transform_0, window_bounds = array<i64: 8, 3>}, {pipeline_mode = #tpu.pipeline_mode<synchronous>, transform_indices = @transform_1, window_bounds = array<i64: 128, 128>}, {transform_indices = @transform_2, window_bounds = array<i64: 8, 128>}]} {
    %c0 = arith.constant 0 : index
    %c0_0 = arith.constant 0 : index
    %0 = vector.load %arg1[%c0, %c0_0] : memref<8x3xi32, #tpu.memory_space<vmem>>, vector<8x3xi32>
    %1 = tpu.iota {dimensions = array<i32: 1>} : vector<8x128xi32>
    %2 = vector.extract_strided_slice %0 {offsets = [0, 0], sizes = [8, 1], strides = [1, 1]} : vector<8x3xi32> to vector<8x1xi32>
    %3 = vector.broadcast %2 : vector<8x1xi32> to vector<8x128xi32>
    %4 = arith.cmpi eq, %1, %3 : vector<8x128xi32>
    %5 = vector.extract_strided_slice %0 {offsets = [0, 1], sizes = [8, 1], strides = [1, 1]} : vector<8x3xi32> to vector<8x1xi32>
    %6 = vector.broadcast %5 : vector<8x1xi32> to vector<8x128xi32>
    %7 = arith.cmpi eq, %1, %6 : vector<8x128xi32>
    %8 = arith.ori %4, %7 : vector<8x128xi1>
    %9 = vector.extract_strided_slice %0 {offsets = [0, 2], sizes = [8, 1], strides = [1, 1]} : vector<8x3xi32> to vector<8x1xi32>
    %10 = vector.broadcast %9 : vector<8x1xi32> to vector<8x128xi32>
    %11 = arith.cmpi eq, %1, %10 : vector<8x128xi32>
    %12 = arith.ori %8, %11 : vector<8x128xi1>
    %13 = arith.extui %12 : vector<8x128xi1> to vector<8x128xi32>
    %14 = arith.sitofp %13 : vector<8x128xi32> to vector<8x128xf32>
    %c0_1 = arith.constant 0 : index
    %c0_2 = arith.constant 0 : index
    %15 = vector.load %arg2[%c0_1, %c0_2] : memref<128x128xf32, #tpu.memory_space<vmem>>, vector<128x128xf32>
    %cst = arith.constant dense<0.000000e+00> : vector<8x128xf32>
    %16 = tpu.matmul %14, %15, %cst {dimension_numbers = #tpu.dot_dimension_numbers<[1], [0], [0], [1], [0, 0, 1, 1], [], []>} : vector<8x128xf32>, vector<128x128xf32>, vector<8x128xf32> -> vector<8x128xf32>
    %c0_3 = arith.constant 0 : index
    %c0_4 = arith.constant 0 : index
    %17 = vector.load %arg3[%c0_3, %c0_4] : memref<8x128xf32, #tpu.memory_space<vmem>>, vector<8x128xf32>
    tpu.vector_store %arg3[%c0_3, %c0_4], %16 {strides = array<i32>} : memref<8x128xf32, #tpu.memory_space<vmem>>, vector<8x128xf32>,
    return
  }
  func.func @transform_0(%arg0: i32) -> (i32, i32) {
    %c0_i32 = arith.constant 0 : i32
    %c0_i32_0 = arith.constant 0 : i32
    return %arg0, %c0_i32 : i32, i32
  }
  func.func @transform_1(%arg0: i32) -> (i32, i32) {
    %c0_i32 = arith.constant 0 : i32
    %c0_i32_0 = arith.constant 0 : i32
    %c0_i32_1 = arith.constant 0 : i32
    return %c0_i32, %c0_i32_0 : i32, i32
  }
  func.func @transform_2(%arg0: i32) -> (i32, i32) {
    %c0_i32 = arith.constant 0 : i32
    %c0_i32_0 = arith.constant 0 : i32
    return %arg0, %c0_i32 : i32, i32
  }
}

</mosaic_0001>

<bundles_post_ra>
// kernel: tpu_custom_call.1
= control target key start
LH: loop header
LB: loop body
LE: loop exit
PB: predicated region body
PF: predicated region fallthrough
CT: control target
= control target key end

     0   :  { %7 = vsyncpa [#allocation3], 0  ;;  %s707_s0 = inlined_call_operand.vmem [shape: s32[16,3], index: 0, kind: input, shape index: {}]   ;;  %s708_s1 = inlined_call_operand.hbm [shape: f32[128,128], index: 1, kind: input, shape index: {}]   ;;  %s709_s2 = inlined_call_operand.hbm [shape: f32[16,128], index: 2, kind: output, shape index: {}]  }
   0x1   :  { %8 = vsyncpa [#allocation4], 0 }
   0x2   :  { %10 = vsyncpa [#allocation4 + $0x1], 0  ;;  %s590_s9 = smov 0   ;;  %s592_s10 = smov 0  }
   0x3   :  { %s594_s11 = smov 0   ;;  %s596_s12 = smov 0  }
   0x4 LB: > { %s611_s13 = sadd.s32 4294967295, %s563_s12   ;;  %s345_s14 = sadd.s32 4294967294, %s563_s12   ;;  %s563_s12 = sphi %s596_s12, %s717_s12   ;;  %s559_s11 = sphi %s594_s11, %s716_s11   ;;  %s555_s10 = sphi %s592_s10, %s715_s10   ;;  %s551_s9 = sphi %s590_s9, %s714_s9  }
   0x5   : > { %s615_s15 = sadd.s32 1, %s563_s12   ;;  %s70_s16 = sadd.s32 1, %s559_s11 }
   0x6   : > { %s67_s17 = ssub.s32 %s563_s12, %s615_s15  ;;  %p80_p0 = scmp.ne.s32.totalorder %s559_s11, %s555_s10 }
   0x7   : > { %p68_p1 = scmp.eq.s32.totalorder %s67_s17, 0  ;;  %p81_p2 = scmp.eq.s32.totalorder %s611_s13, 1 }
   0x8   : > { %p86_p3 = scmp.ne.s32.totalorder %s555_s10, %s551_s9  ;;  %p87_p4 = scmp.eq.s32.totalorder %s345_s14, 1 }
   0x9   : > { %s626_s18 = scalar_select %p68_p1, %s559_s11, %s70_s16  }
   0xa   : > { %p628_p5 = por %p81_p2, %p80_p0  ;;  %p632_p6 = por %p87_p4, %p86_p3 }
   0xb   : > { %p346_p7 = scmp.ge.s32.totalorder %s563_s12, 1  ;;  %p94_p8 = scmp.lt.s32.totalorder %s563_s12, 3 }
   0xc   : > { %s711_s20 = scalar_select %p632_p6, 1, 0 }
   0xd   : > { %p425_p9 = scmp.eq.s32.totalorder %s611_s13, 0  ;;  %p639_p10 = pnand %p346_p7, %p94_p8 }
   0xe   : > { %s565_s22 = smov [#allocation2]  }
   0xf   : > { %s106_s23 = sshll.u32 %s565_s22, 4  ;;  %p417_p11 = pneg %p639_p10  ;;  %s107_s23 = int_to_ptr.vmem [resolvable:$true] %s106_s23 }
  0x10   : > { %s484_s24 = scalar_lea.vmem %s107_s23, 2048  ;;  %p492_p3 = scmp.lt.s32.totalorder %s107_s23, %s107_s23 }
  0x11   : > { %p418_p12 = pnand %p425_p9, %p417_p11  ;;  %p485_p0 = scmp.ne.s32.totalorder %s107_s23, %s484_s24 }
  0x12   : > { %p493_p4 = scmp.lt.s32.totalorder %s484_s24, %s484_s24 }
  0x13   : > { %p475_p13 = pneg %p418_p12 }
  0x14   : > { %p494_p6 = por %p493_p4, %p492_p3 }
  0x15   : > { %p487_p1 = pnand %p485_p0, %p475_p13 }
  0x17   : > { %p488_p2 = pneg %p487_p1 }
  0x19   : > { %p495_p7 = pnand %p494_p6, %p488_p2 }
  0x1b   : > { %498 = shalt.err (!%p495_p7)
}
  0x1c   : > { %s566_s25 = smov 128   ;;  %s567_s26 = smov 8  }
  0x1d   : > { %420 = dma.hbm_to_vmem [thread:$0]  (!%p418_p12), %s708_s1, 2048, %s107_s23, [#allocation3], %s566_s25, %s566_s25, %s567_s26  }
  0x1e   : > { %129 = sbr.rel (%p639_p10) target bundleno = 382 (0x17e), region = 28 }
  0x23   : > { %542 = dma.done.wait (%p425_p9), [#allocation3], 2048  }
  0x24   : > { %544 = vsyncadd (%p425_p9), [#allocation3], 4294965248  ;;  %p150_p8 = scmp.lt.s32.totalorder %s611_s13, 1  ;;  %v568_v0 = vmov 0   ;;  %v569_v1 = vmov 2   ;;  %v570_v2 = vmov 0.0   ;;  %v155_v21 = vlaneseq }
  0x25   : > { %469 = vset.pattern.permute.xlu0 %v568_v0  ;;  %471 = vset.pattern.permute.xlu1 %v569_v1  ;;  %v188_v4 = vld [vmem:[#allocation2 + $0x78] sm:$0xff]  ;;  %v187_v5 = vld [vmem:[#allocation2 + $0x70] sm:$0xff]  ;;  %v186_v6 = vld [vmem:[#allocation2 + $0x68] sm:$0xff]  ;;  %vm571_vm0 = vmmov 0   ;;  %v572_v7 = vmov 1   ;;  %v573_v26 = vmov 1.0  }
  0x26   : > { %s151_s29 = scalar_select %p150_p8, %s611_s13, 1  ;;  %376 = vmatprep.subr.mxu0 %v570_v2  ;;  %408 = vmatprep.mubr.msk.f32.mxu0 %vm571_vm0, %v570_v2  ;;  %v185_v8 = vld [vmem:[#allocation2 + $0x60] sm:$0xff]  ;;  %v184_v9 = vld [vmem:[#allocation2 + $0x58] sm:$0xff]  ;;  %v183_v10 = vld [vmem:[#allocation2 + $0x50] sm:$0xff]  ;;  %v156_v23 = vand.u32 127, %v155_v21 }
  0x27   : > { %377 = vmatpush3.msra.mxu0 %v188_v4  ;;  %v182_v11 = vld [vmem:[#allocation2 + $0x48] sm:$0xff]  ;;  %v181_v12 = vld [vmem:[#allocation2 + $0x40] sm:$0xff]  ;;  %v180_v13 = vld [vmem:[#allocation2 + $0x38] sm:$0xff]  ;;  %s147_s6 = sand.u32 1, %s555_s10   ;;  %s356_s16 = sshll.u32 %s611_s13, 7 }
  0x28   : > { %s352_s30 = sshll.u32 %s151_s29, 3  ;;  %378 = vmatprep.subr.mxu0 %v570_v2  ;;  %v179_v14 = vld [vmem:[#allocation2 + $0x30] sm:$0xff]  ;;  %v178_v15 = vld [vmem:[#allocation2 + $0x28] sm:$0xff]  ;;  %v177_v16 = vld [vmem:[#allocation2 + $0x20] sm:$0xff]  ;;  %s351_s7 = sshll.u32 %s147_s6, 3 }
  0x29   : > { %s153_s5 = scalar_lea.vmem %s707_s0, %s352_s30  ;;  %379 = vmatpush3.msra.mxu0 %v187_v5  ;;  %v176_v17 = vld [vmem:[#allocation2 + $0x18] sm:$0xff]  ;;  %v175_v18 = vld [vmem:[#allocation2 + $0x10] sm:$0xff]  ;;  %v174_v19 = vld [vmem:[#allocation2 + $0x8] sm:$0xff]  ;;  %s149_s8 = scalar_lea.vmem [#allocation5], %s351_s7 }
  0x2a   : > { %v154_v3 = vld [vmem:[%s153_s5] sm:$0xff]  ;;  %380 = vmatprep.subr.mxu0 %v570_v2  ;;  %s274_s14 = sshll.u32 %s149_s8, 4  ;;  %s668_s22 = scalar_lea.hbm %s709_s2, %s356_s16  ;;  %s663_s14 = int_to_ptr.vmem [resolvable:$true] %s274_s14 }
  0x2b   : > { %158 = vperm.xlu0 %469, %v154_v3   ;;  %167 = vperm.xlu1 %471, %v154_v3   ;;  %v173_v20 = vld [vmem:[#allocation2] sm:$0xff]  ;;  %s261_s23 = scalar_lea.sflag [#allocation4], %s147_s6  ;;  %s499_s24 = scalar_lea.vmem %s663_s14, 128 }
  0x2c   : > { %381 = vmatpush3.msra.mxu0 %v186_v6  ;;  %p500_p6 = scmp.ne.s32.totalorder %s663_s14, %s499_s24  ;;  %s574_s13 = smov [#allocation5]  }
  0x2d   : > { %382 = vmatprep.subr.mxu0 %v570_v2  ;;  %s503_s25 = sshll.u32 %s574_s13, 4  ;;  %s504_s25 = int_to_ptr.vmem [resolvable:$false] %s503_s25 }
  0x2e   : > { %383 = vmatpush3.msra.mxu0 %v185_v8  ;;  %p501_p9 = pnand %p500_p6, %p628_p5  ;;  %s505_s26 = scalar_lea.vmem %s504_s25, 256 }
  0x2f   : > { %470 = vset.pattern.permute.xlu0 %v572_v7  ;;  %384 = vmatprep.subr.mxu0 %v570_v2  ;;  %p506_p11 = scmp.lt.s32.totalorder %s663_s14, %s504_s25  ;;  %p507_p12 = scmp.lt.s32.totalorder %s505_s26, %s499_s24 }
  0x30   : > { %162 = vperm.xlu0 %470, %v154_v3   ;;  %385 = vmatpush3.msra.mxu0 %v184_v9  ;;  %p502_p10 = pneg %p501_p9 }
  0x31   : > { %386 = vmatprep.subr.mxu0 %v570_v2  ;;  %p508_p13 = por %p507_p12, %p506_p11 }
  0x32   : > { %387 = vmatpush3.msra.mxu0 %v183_v10 }
  0x33   : > { %388 = vmatprep.subr.mxu0 %v570_v2  ;;  %p509_p0 = pnand %p508_p13, %p502_p10 }
  0x34   : > { %472 = vset.pattern.permute.xlu0 %v569_v1  ;;  %389 = vmatpush3.msra.mxu0 %v182_v11 }
  0x35   : > { %390 = vmatprep.subr.mxu0 %v570_v2 }
  0x36   : > { %391 = vmatpush3.msra.mxu0 %v181_v12 }
  0x37   : > { %392 = vmatprep.subr.mxu0 %v570_v2 }
  0x38   : > { %393 = vmatpush3.msra.mxu0 %v180_v13 }
  0x39   : > { %394 = vmatprep.subr.mxu0 %v570_v2 }
  0x3a   : > { %395 = vmatpush3.msra.mxu0 %v179_v14 }
  0x3b   : > { %396 = vmatprep.subr.mxu0 %v570_v2 }
  0x3c   : > { %397 = vmatpush3.msra.mxu0 %v178_v15 }
  0x3d   : > { %398 = vmatprep.subr.mxu0 %v570_v2 }
  0x3e   : > { %399 = vmatpush3.msra.mxu0 %v177_v16 }
  0x3f   : > { %400 = vmatprep.subr.mxu0 %v570_v2 }
  0x40   : > { %401 = vmatpush3.msra.mxu0 %v176_v17 }
  0x41   : > { %402 = vmatprep.subr.mxu0 %v570_v2 }
  0x42   : > { %403 = vmatpush3.msra.mxu0 %v175_v18 }
  0x43   : > { %404 = vmatprep.subr.mxu0 %v570_v2 }
  0x44   : > { %405 = vmatpush3.msra.mxu0 %v174_v19 }
  0x45   : > { %406 = vmatprep.subr.mxu0 %v570_v2 }
  0x46   : > { %407 = vmatpush3.msra.mxu0 %v173_v20 }
  0xa6   : > { %v159_v22 = vpop.permute.xlu0 %158  ;;  %v168_v24 = vpop.permute.xlu1 %167 }
  0xa7   : > { %vm169_vm1 = vcmp.eq.s32.totalorder %v156_v23, %v168_v24  ;;  %vm160_vm2 = vcmp.eq.s32.totalorder %v156_v23, %v159_v22 }
  0xab   : > { %v163_v25 = vpop.permute.xlu0 %162 }
  0xac   : > { %vm164_vm3 = vcmp.eq.s32.totalorder %v156_v23, %v163_v25 }
  0xad   : > { %vm165_vm4 = vmor %vm160_vm2, %vm164_vm3 }
  0xae   : > { %vm170_vm5 = vmor %vm165_vm4, %vm169_vm1 }
  0xaf   : > { %409 = vmatmul.mubr.msk.f32.vlgmr.msra.gmra.mxu0 %vm170_vm5, %v573_v26 }
 0x16f   : > { %v255_v27 = vpop.f32.mrf.mxu0 }
 0x170   : > { %259 = vst [vmem:[%s149_s8] sm:$0xff] %v255_v27 }
 0x171   : > { %v410_v28 = vpop.f32.mrf.mxu0 }
 0x172   : > { %512 = shalt.err (!%p509_p0)
}
 0x173   : > { %s513_s27 = scalar_lea.hbm %s668_s22, 128  ;;  %s517_s30 = scalar_lea.hbm %s709_s2, 256 }
 0x174   : > { %p514_p1 = scmp.ne.s32.totalorder %s668_s22, %s513_s27  ;;  %p518_p4 = scmp.lt.s32.totalorder %s668_s22, %s709_s2 }
 0x175   : > { %p519_p7 = scmp.lt.s32.totalorder %s517_s30, %s513_s27 }
 0x176   : > { %p515_p2 = pnand %p514_p1, %p628_p5 }
 0x177   : > { %p520_p8 = por %p519_p7, %p518_p4 }
 0x178   : > { %p516_p3 = pneg %p515_p2 }
 0x17a   : > { %p521_p6 = pnand %p520_p8, %p516_p3 }
 0x17c   : > { %524 = shalt.err (!%p521_p6)
}
 0x17d   : > { %415 = dma.vmem_to_hbm [thread:$0]  (%p628_p5), %s663_s14, 128, %s668_s22, %s261_s23  }
 0x17e PF: > { %p427_p9 = scmp.ge.s32.totalorder %s563_s12, 2  ;;  %s286_s5 = sand.u32 1, %s551_s9  }
 0x17f   : > { %p713_p10 = scmp.ne.s32.totalorder %s711_s20, 0  ;;  %s287_s6 = scalar_lea.sflag [#allocation4], %s286_s5 }
 0x181   : > { %p422_p11 = pnand %p427_p9, %p713_p10 }
 0x183   : > { %p423_p12 = pneg %p422_p11 }
 0x185   : > { %546 = dma.done.wait (%p423_p12), %s287_s6, 128  }
 0x186   : > { %548 = vsyncadd (%p423_p12), %s287_s6, 4294967168  ;;  %p13_p13 = scmp.ge.s32.totalorder %s615_s15, 4   ;;  %s714_s9 = smov %s555_s10 }
 0x187   : > { %s715_s10 = smov %s559_s11  ;;  %s716_s11 = smov %s626_s18 }
 0x188   : > { %s717_s12 = smov %s615_s15  ;;  %15 = sbr.rel (!%p13_p13) target bundleno = 4 (0x4), region = 68 }
 0x18d   :  { %292 = vsyncpa [#allocation3], 1 }
 0x18e   :  { %294 = vsyncpa [#allocation3 + $0x1], 1 }
 0x18f   :  { %295 = vsyncpa [#allocation4], 1 }
 0x190   :  { %297 = vsyncpa [#allocation4 + $0x1], 1 }

</bundles_post_ra>
